<compile_context>
chip_gen: v6e
topology: v6e:2x2x1
jax: 0.10.0
libtpu: 0.0.40
codegen_flags: <defaults>
</compile_context>

<pallas_src>
import jax
import jax.numpy as jnp
import numpy as np
from jax.experimental import pallas as pl
from jax.experimental.pallas import tpu as pltpu

_SMALL_BYPASS_BYTES = 1 << 20  # below this, skip the kernel launch entirely


def _hbm_copy_kernel(x_hbm_ref, o_hbm_ref, sem):
    # One whole-array HBM->HBM DMA: no VMEM staging, no pipeline steps, no
    # vector load/store traffic.  Correct for any shape/dtype/channel count.
    cp = pltpu.make_async_copy(x_hbm_ref, o_hbm_ref, sem)
    cp.start()
    cp.wait()


def _pallas_identity_copy(x: jax.Array) -> jax.Array:
    nbytes = x.size * jnp.dtype(x.dtype).itemsize
    return pl.pallas_call(
        _hbm_copy_kernel,
        out_shape=jax.ShapeDtypeStruct(x.shape, x.dtype),
        in_specs=[pl.BlockSpec(memory_space=pl.ANY)],
        out_specs=pl.BlockSpec(memory_space=pl.ANY),
        scratch_shapes=[pltpu.SemaphoreType.DMA],
        cost_estimate=pl.CostEstimate(
            flops=0, transcendentals=0, bytes_accessed=2 * nbytes
        ),
    )(x)


class InputAdapter:
    """JAX/Pallas counterpart of the abstract PyTorch InputAdapter base class."""

    def __init__(
        self,
        num_input_channels: int,
        small_input_bypass_bytes: int = _SMALL_BYPASS_BYTES,
    ):
        self._num_input_channels = num_input_channels
        self._small_input_bypass_bytes = small_input_bypass_bytes

    @property
    def num_input_channels(self):
        return self._num_input_channels

    def __call__(self, x: jax.Array, materialize: bool = True) -> jax.Array:
        return self.forward(x, materialize=materialize)

    def forward(self, x: jax.Array, materialize: bool = True) -> jax.Array:
        # x: [B, N, C] (batch, num_points, channels) with C == num_input_channels.
        assert x.ndim == 3, "expected [batch, num_points, channels]"
        _, _, C = x.shape
        assert C == self._num_input_channels, (
            f"input channels {C} != adapter num_input_channels "
            f"{self._num_input_channels}"
        )
        if not materialize:
            # Preferred production path: identity costs zero HBM traffic.
            return x
        nbytes = x.size * jnp.dtype(x.dtype).itemsize
        if nbytes < self._small_input_bypass_bytes:
            # Tiny input: kernel launch overhead dwarfs the copy; the identity
            # result is bit-identical to the input, so just return it.
            return x
        return _pallas_identity_copy(x)


if __name__ == "__main__":
    key = jax.random.PRNGKey(0)
    k0, k1, k2 = jax.random.split(key, 3)

    # Small point-cloud example, forced through the Pallas HBM->HBM DMA path.
    B, N, C = 2, 8, 32
    x = jax.random.normal(k0, (B, N, C), dtype=jnp.float32)
    x_host = np.asarray(x)
    adapter = InputAdapter(num_input_channels=C, small_input_bypass_bytes=0)
    y = jax.block_until_ready(adapter(x))
    assert y.shape == (B, N, C)
    assert y.dtype == x.dtype
    np.testing.assert_array_equal(np.asarray(y), x_host)
    assert adapter.num_input_channels == C

    # Larger input (>= 1 MiB): takes the kernel path under the default bypass
    # threshold; a single big DMA moves it at near-full HBM bandwidth.
    x_big = jax.random.normal(k1, (2, 4096, 32), dtype=jnp.float32)
    x_big_host = np.asarray(x_big)
    y_big = jax.block_until_ready(InputAdapter(32)(x_big))
    np.testing.assert_array_equal(np.asarray(y_big), x_big_host)

    # Non-128-divisible channel count (raw xyz): DMA path is layout-agnostic,
    # no masked partial stores.
    x_xyz = jax.random.normal(k2, (2, 40, 3), dtype=jnp.float32)
    x_xyz_host = np.asarray(x_xyz)
    y_xyz = jax.block_until_ready(
        InputAdapter(3, small_input_bypass_bytes=0)(x_xyz)
    )
    np.testing.assert_array_equal(np.asarray(y_xyz), x_xyz_host)

    # Zero-cost paths.
    assert InputAdapter(C)(x, materialize=False) is x  # explicit no-materialize
    assert InputAdapter(C)(x) is x                      # small-input bypass

    print("KERNEL_OK")
</pallas_src>

<mosaic_0001>
module attributes {stable_mosaic.version = 11 : i64} {
  func.func @_hbm_copy_kernel(%arg0: memref<2x8x32xf32, #tpu.memory_space<any>>, %arg1: memref<2x8x32xf32, #tpu.memory_space<any>>, %arg2: memref<!tpu.dma_semaphore, #tpu.memory_space<semaphore_mem>>) attributes {dimension_semantics = [], scalar_prefetch = 0 : i64, scratch_operands = 1 : i64, tpu.core_type = #tpu.core_type<tc>} {
    tpu.enqueue_dma source(%arg0 : memref<2x8x32xf32, #tpu.memory_space<any>>) target(%arg1 : memref<2x8x32xf32, #tpu.memory_space<any>>) target_semaphore(%arg2 : memref<!tpu.dma_semaphore, #tpu.memory_space<semaphore_mem>>)
    tpu.wait_dma2 semaphore(%arg2 : memref<!tpu.dma_semaphore, #tpu.memory_space<semaphore_mem>>) src(%arg0 : memref<2x8x32xf32, #tpu.memory_space<any>>) dst(%arg1 : memref<2x8x32xf32, #tpu.memory_space<any>>)
    return
  }
}

</mosaic_0001>

<bundles_post_ra>
// kernel: tpu_custom_call.1
= control target key start
LH: loop header
LB: loop body
LE: loop exit
PB: predicated region body
PF: predicated region fallthrough
CT: control target
= control target key end

     0   :  { %s29_s6 = smov [#allocation2]   ;;  %s30_s7 = smov 131072   ;;  %s48_s0 = inlined_call_operand.hbm [shape: f32[2,8,32], index: 0, kind: input, shape index: {}]   ;;  %s49_s1 = inlined_call_operand.hbm [shape: f32[2,8,32], index: 1, kind: output, shape index: {}]  }
   0x1   :  { %s31_s8 = smov 0  }
   0x2   :  { %12 = dma.general %s48_s0, 256, %s49_s1, %s29_s6, %s30_s7, [#allocation4], %s31_s8, 0  }
   0x3   :  { %27 = dma.done.wait [#allocation2], 256 }
   0x4   :  { %28 = vsyncadd [#allocation2], 4294967040 }
   0x5   :  { %17 = vsyncmov [#allocation2] }
   0x8   :  { %s18_s13 = vpop.sfrf %17 }
   0x9   :  { %p23_p0 = scmp.ne.s32.totalorder %s18_s13, 0 }
   0xb   :  { %22 = shalt.err (%p23_p0)  }

</bundles_post_ra>
